<compile_context>
chip_gen: v6e
topology: v6e:2x2x1
jax: 0.10.0
libtpu: 0.0.40
codegen_flags: <defaults>
</compile_context>

<pallas_src>
import functools

import jax
import jax.numpy as jnp
from jax.experimental import pallas as pl
from jax.experimental.pallas import tpu as pltpu


def _linear_kernel(x_ref, w_ref, b_ref, o_ref):
    # x_ref: (TM, In)   activations tile (pipelined over the batch)
    # w_ref: (In, Out)  pre-transposed weight, resident across grid steps
    # b_ref: (1, Out)   bias, resident across grid steps
    # o_ref: (TM, Out)  output tile
    acc = jnp.dot(x_ref[...], w_ref[...], preferred_element_type=jnp.float32)
    o_ref[...] = (acc + b_ref[...].astype(jnp.float32)).astype(o_ref.dtype)


def prepare_weight(weight):
    """One-time layout plumbing: PyTorch nn.Linear weight (Out, In) -> (In, Out).

    Do this once per parameter set (outside the per-step forward) so the
    transpose is not re-materialized on every call.
    """
    return jnp.asarray(weight).T


@functools.partial(jax.jit, static_argnames=("block_m",))
def linear_regression_forward(x, w_t, bias, *, block_m: int = 512):
    """y = x @ w_t + bias via a Pallas TPU kernel.

    w_t is the pre-transposed weight, shape (inputSize, outputSize)
    (see `prepare_weight`).
    """
    B, In = x.shape
    In_w, Out = w_t.shape
    assert In == In_w, "weight / input feature mismatch"

    bias2d = bias.reshape(1, Out)
    itemsize = jnp.dtype(x.dtype).itemsize

    # VMEM-budget-driven batch tile: double-buffered x/out tiles must fit in a
    # conservative budget (safe on v5e/v6e/v7x scoped-VMEM defaults and on
    # v7x's 64 MiB physical ceiling).
    tile_budget_bytes = 24 * (1 << 20)
    max_bm = tile_budget_bytes // (2 * (In + Out) * itemsize)
    bm = max(8, (min(block_m, max_bm) // 8) * 8)

    cost = pl.CostEstimate(
        flops=2 * B * In * Out,
        bytes_accessed=itemsize * (B * In + In * Out + Out + B * Out),
        transcendentals=0,
    )

    if B <= bm:
        # Small-batch path: single straight-line kernel, whole arrays resident
        # in VMEM, no grid, no padding, no post-slice.
        return pl.pallas_call(
            _linear_kernel,
            out_shape=jax.ShapeDtypeStruct((B, Out), x.dtype),
            cost_estimate=cost,
        )(x, w_t, bias2d)

    # Batch-tiled path: pipeline x / out over the batch (ragged last block is
    # handled by Pallas; OOB tail rows are masked on writeback), keep the
    # weight and bias resident across all grid steps.
    grid = (pl.cdiv(B, bm),)
    needed = (2 * 2 * bm * (In + Out) + In * Out + Out) * itemsize
    vmem_limit = int(min(max(4 * needed, 16 * (1 << 20)), 48 * (1 << 20)))

    return pl.pallas_call(
        _linear_kernel,
        out_shape=jax.ShapeDtypeStruct((B, Out), x.dtype),
        grid=grid,
        in_specs=[
            pl.BlockSpec((bm, In), lambda i: (i, 0)),      # batch-tiled x
            pl.BlockSpec((In, Out), lambda i: (0, 0)),     # resident weight
            pl.BlockSpec((1, Out), lambda i: (0, 0)),      # resident bias
        ],
        out_specs=pl.BlockSpec((bm, Out), lambda i: (i, 0)),
        compiler_params=pltpu.CompilerParams(
            dimension_semantics=("parallel",),  # v7x: 2 TCs split the batch
            vmem_limit_bytes=vmem_limit,
        ),
        cost_estimate=cost,
    )(x, w_t, bias2d)


if __name__ == "__main__":
    # Module hyperparameters (inputSize, outputSize) chosen small.
    batch, input_size, output_size = 8, 32, 16

    key = jax.random.PRNGKey(0)
    kx, kw, kb = jax.random.split(key, 3)

    # Deterministic synthetic parameters (mimic nn.Linear's uniform init range).
    bound = 1.0 / (input_size ** 0.5)
    x = jax.random.normal(kx, (batch, input_size), dtype=jnp.float32)
    weight = jax.random.uniform(
        kw, (output_size, input_size), minval=-bound, maxval=bound,
        dtype=jnp.float32)
    bias = jax.random.uniform(
        kb, (output_size,), minval=-bound, maxval=bound, dtype=jnp.float32)

    # One-time weight layout transform (outside the per-step forward).
    w_t = prepare_weight(weight)

    # --- small-batch (no-grid) path ---
    y = linear_regression_forward(x, w_t, bias)
    y = jax.block_until_ready(y)
    y_ref = x @ weight.T + bias
    assert y.shape == (batch, output_size)
    assert jnp.allclose(y, y_ref, atol=1e-5, rtol=1e-5), "mismatch (small path)"

    # --- batch-tiled path (non-multiple batch exercises the ragged last block) ---
    big_batch = 1031
    xb = jax.random.normal(kx, (big_batch, input_size), dtype=jnp.float32)
    yb = linear_regression_forward(xb, w_t, bias, block_m=256)
    yb = jax.block_until_ready(yb)
    yb_ref = xb @ weight.T + bias
    assert yb.shape == (big_batch, output_size)
    assert jnp.allclose(yb, yb_ref, atol=1e-5, rtol=1e-5), "mismatch (tiled path)"

    print("KERNEL_OK")
</pallas_src>

<mosaic_0001>
module attributes {stable_mosaic.version = 11 : i64} {
  func.func @_linear_kernel(%arg0: memref<8x32xf32, #tpu.memory_space<vmem>>, %arg1: memref<32x16xf32, #tpu.memory_space<vmem>>, %arg2: memref<1x16xf32, #tpu.memory_space<vmem>>, %arg3: memref<8x16xf32, #tpu.memory_space<vmem>>) attributes {dimension_semantics = [], scalar_prefetch = 0 : i64, scratch_operands = 0 : i64, tpu.core_type = #tpu.core_type<tc>} {
    %c0 = arith.constant 0 : index
    %c0_0 = arith.constant 0 : index
    %0 = vector.load %arg0[%c0, %c0_0] : memref<8x32xf32, #tpu.memory_space<vmem>>, vector<8x32xf32>
    %c0_1 = arith.constant 0 : index
    %c0_2 = arith.constant 0 : index
    %1 = vector.load %arg1[%c0_1, %c0_2] : memref<32x16xf32, #tpu.memory_space<vmem>>, vector<32x16xf32>
    %cst = arith.constant dense<0.000000e+00> : vector<8x16xf32>
    %2 = tpu.matmul %0, %1, %cst {dimension_numbers = #tpu.dot_dimension_numbers<[1], [0], [0], [1], [0, 0, 1, 1], [], []>} : vector<8x32xf32>, vector<32x16xf32>, vector<8x16xf32> -> vector<8x16xf32>
    %c0_3 = arith.constant 0 : index
    %c0_4 = arith.constant 0 : index
    %3 = vector.load %arg2[%c0_3, %c0_4] : memref<1x16xf32, #tpu.memory_space<vmem>>, vector<1x16xf32>
    %4 = vector.broadcast %3 : vector<1x16xf32> to vector<8x16xf32>
    %5 = arith.addf %2, %4 : vector<8x16xf32>
    %c0_5 = arith.constant 0 : index
    %c0_6 = arith.constant 0 : index
    %6 = vector.load %arg3[%c0_5, %c0_6] : memref<8x16xf32, #tpu.memory_space<vmem>>, vector<8x16xf32>
    tpu.vector_store %arg3[%c0_5, %c0_6], %5 {strides = array<i32>} : memref<8x16xf32, #tpu.memory_space<vmem>>, vector<8x16xf32>,
    return
  }
}

</mosaic_0001>

<bundles_post_ra>
// kernel: linear_regression_forward.1
= control target key start
LH: loop header
LB: loop body
LE: loop exit
PB: predicated region body
PF: predicated region fallthrough
CT: control target
= control target key end

     0   :  { %v160_v1 = vmov 0.0   ;;  %vm161_vm0 = vmmov 0   ;;  %s204_s0 = inlined_call_operand.vmem [shape: f32[8,32], index: 0, kind: input, shape index: {}]   ;;  %s205_s1 = inlined_call_operand.vmem [shape: f32[32,16], index: 1, kind: input, shape index: {}]   ;;  %s206_s2 = inlined_call_operand.vmem [shape: f32[1,16], index: 2, kind: input, shape index: {}]   ;;  %s207_s3 = inlined_call_operand.hbm [shape: f32[8,16], index: 3, kind: output, shape index: {}]  }
   0x1   :  { %v19_v0 = vld [vmem:[%s205_s1 + $0x18] sm:$0xff]  ;;  %124 = vmatprep.subr.mxu0 %v160_v1  ;;  %v18_v2 = vld [vmem:[%s205_s1 + $0x10] sm:$0xff]  ;;  %132 = vmatprep.mubr.msk.f32.mxu0 %vm161_vm0, %v160_v1 }
   0x2   :  { %125 = vmatpush3.msra.mxu0 %v19_v0 }
   0x3   :  { %8 = vsyncpa [#allocation3], 0  ;;  %126 = vmatprep.subr.mxu0 %v160_v1  ;;  %v17_v3 = vld [vmem:[%s205_s1 + $0x8] sm:$0xff]  ;;  %v16_v4 = vld [vmem:[%s205_s1] sm:$0xff]  ;;  %vm27_vm1 = vcmask 261120   ;;  %s162_s24 = smov [#allocation2]  }
   0x4   :  { %127 = vmatpush3.msra.mxu0 %v18_v2  ;;  %v15_v5 = vld [vmem:[%s204_s0] sm:$0xff]  ;;  %s109_s25 = sshll.u32 %s162_s24, 4  ;;  %vm101_vm2 = vcmask 130048   ;;  %s110_s25 = int_to_ptr.vmem [resolvable:$true] %s109_s25 }
   0x5   :  { %128 = vmatprep.subr.mxu0 %v160_v1  ;;  %v117_v6 = vld [vmem:[%s206_s2] ss:$0 sm:$0xff]  ;;  %s138_s1 = scalar_lea.vmem %s110_s25, 128  ;;  %p143_p1 = scmp.lt.s32.totalorder %s110_s25, %s110_s25 }
   0x6   :  { %129 = vmatpush3.msra.mxu0 %v17_v3  ;;  %p139_p0 = scmp.ne.s32.totalorder %s110_s25, %s138_s1  ;;  %p144_p2 = scmp.lt.s32.totalorder %s138_s1, %s138_s1 }
   0x7   :  { %130 = vmatprep.subr.mxu0 %v160_v1 }
   0x8   :  { %131 = vmatpush3.msra.mxu0 %v16_v4  ;;  %p145_p3 = por %p144_p2, %p143_p1 }
   0x9   :  { %133 = vmatmul.mubr.msk.f32.vlgmr.msra.gmra.mxu0 %vm27_vm1, %v15_v5 }
   0xa   :  { %p146_p4 = pnand %p145_p3, %p139_p0 }
  0xc9   :  { %v97_v7 = vpop.f32.mrf.mxu0 }
  0xca   :  { %v98_v8 = vadd.f32 %v117_v6, %v97_v7 }
  0xcb   :  { %v134_v9 = vpop.f32.mrf.mxu0 }
  0xcc   :  { %102 = vst.msk [vmem:[#allocation2] sm:$0xff] %vm101_vm2, %v98_v8 }
  0xcd   :  { %149 = shalt.err (!%p146_p4)
}
  0xce   :  { %112 = dma.vmem_to_hbm [thread:$0]  %s110_s25, 128, %s207_s3, [#allocation3]  }
  0xcf   :  { %158 = dma.done.wait [#allocation3], 128  }
  0xd0   :  { %159 = vsyncadd [#allocation3], 4294967168 }
  0xd1   :  { %116 = vsyncpa [#allocation3], 1 }

</bundles_post_ra>
